<compile_context>
chip_gen: v7x
topology: tpu7x:2x2x1
jax: 0.10.0
libtpu: 0.0.40
codegen_flags: <defaults>
</compile_context>

<pallas_src>
import functools

import jax
import jax.numpy as jnp
from jax.experimental import pallas as pl
from jax.experimental.pallas import tpu as pltpu

LANE = 128
_VMEM_BUDGET_BYTES = 12 << 20  # conservative: below v5e's 16 MiB default scoped VMEM


def _fused_gaussian_kernel(x_ref, w_ref, b_ref, mu_ref, std_ref, *, d_out):
    """One fused MXU pass over the concatenated [W_mu | W_sigma] weight.

    x_ref  : (tile_b, D_in)
    w_ref  : (D_in, 2*D_out)   -- [mu head | sigma head], un-padded
    b_ref  : (1,    2*D_out)
    mu_ref : (tile_b, D_out)
    std_ref: (tile_b, D_out)
    """
    y = jnp.dot(x_ref[...], w_ref[...], preferred_element_type=jnp.float32)
    y = y + b_ref[...]  # (1, 2*D_out) broadcasts over rows
    mu_ref[...] = y[:, :d_out].astype(mu_ref.dtype)
    std_ref[...] = jnp.exp(y[:, d_out:]).astype(std_ref.dtype)


def prepare_gaussian_params(w_mu, b_mu, w_sigma, b_sigma):
    """Hoist the (static) weight/bias concatenation out of the per-call path."""
    w_cat = jnp.concatenate([w_mu, w_sigma], axis=1)                      # (D_in, 2*D_out)
    b_cat = jnp.concatenate([b_mu.reshape(1, -1), b_sigma.reshape(1, -1)], axis=1)
    return w_cat, b_cat


def gaussian_layer(x, w_cat, b_cat, *, block_b=1024):
    """x: (B, D_in); w_cat: (D_in, 2*D_out); b_cat: (1, 2*D_out). Returns (mu, std)."""
    B, D_in = x.shape
    two_d_out = w_cat.shape[1]
    D_out = two_d_out // 2
    dtype = x.dtype

    # VMEM budget: double-buffered x tile + both output tiles (f32), weights are tiny
    # and resident.  Keeps big tiles portable across v5e (16 MiB scoped default),
    # v6e (32/128 MiB) and v7x (32/64 MiB).
    bytes_per_row = 4 * (D_in + two_d_out) * 2
    max_bb = max(LANE, (_VMEM_BUDGET_BYTES // max(bytes_per_row, 1)) // LANE * LANE)
    block_b = min(block_b, max_bb)

    kernel = functools.partial(_fused_gaussian_kernel, d_out=D_out)

    out_shapes = (
        jax.ShapeDtypeStruct((B, D_out), dtype),
        jax.ShapeDtypeStruct((B, D_out), dtype),
    )
    cost = pl.CostEstimate(
        flops=2 * B * D_in * two_d_out,
        transcendentals=B * D_out,
        bytes_accessed=4 * (B * D_in + D_in * two_d_out + two_d_out + B * two_d_out),
    )

    if B <= block_b:
        # Latency-bound small case: single un-gridded invocation, no pipeline
        # prologue/epilogue, no double-buffering; everything resident in VMEM.
        mu, std = pl.pallas_call(
            kernel,
            out_shape=out_shapes,
            in_specs=[
                pl.BlockSpec(memory_space=pltpu.MemorySpace.VMEM),
                pl.BlockSpec(memory_space=pltpu.MemorySpace.VMEM),
                pl.BlockSpec(memory_space=pltpu.MemorySpace.VMEM),
            ],
            out_specs=(
                pl.BlockSpec(memory_space=pltpu.MemorySpace.VMEM),
                pl.BlockSpec(memory_space=pltpu.MemorySpace.VMEM),
            ),
            cost_estimate=cost,
        )(x, w_cat, b_cat)
    else:
        # Batched case: tile over B ("parallel" -> megacore sharding on v7x), keep the
        # tiny concatenated weight/bias resident across all grid steps.  No wrapper
        # padding: Pallas handles the ragged last block (OOB rows dropped on write;
        # exp on garbage rows of that block is discarded, never contaminating valid rows).
        n_blk = pl.cdiv(B, block_b)
        mu, std = pl.pallas_call(
            kernel,
            out_shape=out_shapes,
            grid=(n_blk,),
            in_specs=[
                pl.BlockSpec((block_b, D_in), lambda i: (i, 0)),
                pl.BlockSpec((D_in, two_d_out), lambda i: (0, 0)),
                pl.BlockSpec((1, two_d_out), lambda i: (0, 0)),
            ],
            out_specs=(
                pl.BlockSpec((block_b, D_out), lambda i: (i, 0)),
                pl.BlockSpec((block_b, D_out), lambda i: (i, 0)),
            ),
            compiler_params=pltpu.CompilerParams(
                dimension_semantics=("parallel",)),
            cost_estimate=cost,
        )(x, w_cat, b_cat)

    return mu, std


def reference(x, w_mu, b_mu, w_sigma, b_sigma):
    mu = x @ w_mu + b_mu
    std = jnp.exp(x @ w_sigma + b_sigma)
    return mu, std


if __name__ == "__main__":
    key = jax.random.PRNGKey(0)
    k_x, k_wm, k_bm, k_ws, k_bs, k_x2 = jax.random.split(key, 6)

    D_in, D_out = 32, 32  # shapes consistent with Linear(input_dim, output_dim)

    # Deterministic parameter init (mimics PyTorch Linear's uniform(-1/sqrt(fan_in), +)).
    bound = 1.0 / jnp.sqrt(jnp.float32(D_in))
    w_mu = jax.random.uniform(k_wm, (D_in, D_out), jnp.float32, -bound, bound)
    b_mu = jax.random.uniform(k_bm, (D_out,), jnp.float32, -bound, bound)
    w_sigma = jax.random.uniform(k_ws, (D_in, D_out), jnp.float32, -bound, bound)
    b_sigma = jax.random.uniform(k_bs, (D_out,), jnp.float32, -bound, bound)

    # Weight prep done ONCE (parameter-init time), not per call.
    w_cat, b_cat = prepare_gaussian_params(w_mu, b_mu, w_sigma, b_sigma)
    jax.block_until_ready((w_cat, b_cat))

    # --- small, latency-bound case: single un-gridded invocation ---
    B = 8
    x = jax.random.normal(k_x, (B, D_in), dtype=jnp.float32)
    mu, std = gaussian_layer(x, w_cat, b_cat)
    jax.block_until_ready((mu, std))
    mu_ref, std_ref = reference(x, w_mu, b_mu, w_sigma, b_sigma)
    assert jnp.allclose(mu, mu_ref, atol=1e-5, rtol=1e-5)
    assert jnp.allclose(std, std_ref, atol=1e-5, rtol=1e-5)

    # --- batched case: exercises the batch-tiled ("parallel") grid path,
    #     with a ragged last block (300 = 2*128 + 44) and no wrapper padding ---
    B2 = 300
    x2 = jax.random.normal(k_x2, (B2, D_in), dtype=jnp.float32)
    mu2, std2 = gaussian_layer(x2, w_cat, b_cat, block_b=128)
    jax.block_until_ready((mu2, std2))
    mu2_ref, std2_ref = reference(x2, w_mu, b_mu, w_sigma, b_sigma)
    assert jnp.allclose(mu2, mu2_ref, atol=1e-5, rtol=1e-5)
    assert jnp.allclose(std2, std2_ref, atol=1e-5, rtol=1e-5)

    print("KERNEL_OK")
</pallas_src>

<mosaic_0001>
module attributes {stable_mosaic.version = 11 : i64} {
  func.func @_fused_gaussian_kernel(%arg0: memref<8x32xf32, #tpu.memory_space<vmem>>, %arg1: memref<32x64xf32, #tpu.memory_space<vmem>>, %arg2: memref<1x64xf32, #tpu.memory_space<vmem>>, %arg3: memref<8x32xf32, #tpu.memory_space<vmem>>, %arg4: memref<8x32xf32, #tpu.memory_space<vmem>>) attributes {dimension_semantics = [], scalar_prefetch = 0 : i64, scratch_operands = 0 : i64, tpu.core_type = #tpu.core_type<tc>} {
    %c0 = arith.constant 0 : index
    %c0_0 = arith.constant 0 : index
    %0 = vector.load %arg0[%c0, %c0_0] : memref<8x32xf32, #tpu.memory_space<vmem>>, vector<8x32xf32>
    %c0_1 = arith.constant 0 : index
    %c0_2 = arith.constant 0 : index
    %1 = vector.load %arg1[%c0_1, %c0_2] : memref<32x64xf32, #tpu.memory_space<vmem>>, vector<32x64xf32>
    %cst = arith.constant dense<0.000000e+00> : vector<8x64xf32>
    %2 = tpu.matmul %0, %1, %cst {dimension_numbers = #tpu.dot_dimension_numbers<[1], [0], [0], [1], [0, 0, 1, 1], [], []>} : vector<8x32xf32>, vector<32x64xf32>, vector<8x64xf32> -> vector<8x64xf32>
    %c0_3 = arith.constant 0 : index
    %c0_4 = arith.constant 0 : index
    %3 = vector.load %arg2[%c0_3, %c0_4] : memref<1x64xf32, #tpu.memory_space<vmem>>, vector<1x64xf32>
    %4 = vector.broadcast %3 : vector<1x64xf32> to vector<8x64xf32>
    %5 = arith.addf %2, %4 : vector<8x64xf32>
    %6 = vector.extract_strided_slice %5 {offsets = [0, 0], sizes = [8, 32], strides = [1, 1]} : vector<8x64xf32> to vector<8x32xf32>
    %c0_5 = arith.constant 0 : index
    %c0_6 = arith.constant 0 : index
    %7 = vector.load %arg3[%c0_5, %c0_6] : memref<8x32xf32, #tpu.memory_space<vmem>>, vector<8x32xf32>
    tpu.vector_store %arg3[%c0_5, %c0_6], %6 {strides = array<i32>} : memref<8x32xf32, #tpu.memory_space<vmem>>, vector<8x32xf32>,
    %8 = vector.extract_strided_slice %5 {offsets = [0, 32], sizes = [8, 32], strides = [1, 1]} : vector<8x64xf32> to vector<8x32xf32>
    %9 = math.exp %8 : vector<8x32xf32>
    %c0_7 = arith.constant 0 : index
    %c0_8 = arith.constant 0 : index
    %10 = vector.load %arg4[%c0_7, %c0_8] : memref<8x32xf32, #tpu.memory_space<vmem>>, vector<8x32xf32>
    tpu.vector_store %arg4[%c0_7, %c0_8], %9 {strides = array<i32>} : memref<8x32xf32, #tpu.memory_space<vmem>>, vector<8x32xf32>,
    return
  }
}

</mosaic_0001>

<bundles_post_ra>
// kernel: tpu_custom_call.1
= control target key start
LH: loop header
LB: loop body
LE: loop exit
PB: predicated region body
PF: predicated region fallthrough
CT: control target
= control target key end

     0   :  { %10 = vsyncpa [#allocation3], 0  ;;  %s396_s0 = inlined_call_operand.hbm [shape: f32[8,32], index: 0, kind: input, shape index: {}]   ;;  %s397_s1 = inlined_call_operand.hbm [shape: f32[32,64], index: 1, kind: input, shape index: {}]   ;;  %s398_s2 = inlined_call_operand.vmem [shape: f32[1,64], index: 2, kind: input, shape index: {}]   ;;  %s399_s3 = inlined_call_operand.hbm [shape: f32[8,32], index: 3, kind: output, shape index: {0}]   ;;  %s400_s4 = inlined_call_operand.hbm [shape: f32[8,32], index: 4, kind: output, shape index: {1}]  }
   0x1   :  { %11 = vsyncpa [#allocation6], 0 }
   0x2   :  { %12 = vsyncpa [#allocation4], 0 }
   0x3   :  { %13 = vsyncpa [#allocation9], 0  ;;  %s300_s15 = smov [#allocation2]   ;;  %s301_s17 = smov [#allocation5]  }
   0x4   :  { %s20_s16 = sshll.u32 %s300_s15, 4  ;;  %s29_s18 = sshll.u32 %s301_s17, 4  ;;  %s21_s16 = int_to_ptr.vmem [resolvable:$true] %s20_s16  ;;  %s335_s18 = int_to_ptr.vmem [resolvable:$true] %s29_s18 }
   0x5   :  { %s204_s21 = scalar_lea.hbm %s396_s0, 128 }
   0x6   :  { %p205_p0 = scmp.ne.s32.totalorder %s396_s0, %s204_s21  ;;  %p208_p1 = scmp.lt.u32.totalorder %s204_s21, %s396_s0 }
   0x8   :  { %p210_p2 = pnand %p208_p1, %p205_p0 }
   0xa   :  { %213 = shalt.err (!%p210_p2)
}
   0xb   :  { %s214_s26 = scalar_lea.vmem %s21_s16, 128  ;;  %p219_p4 = scmp.lt.s32.totalorder %s21_s16, %s21_s16 }
   0xc   :  { %p215_p3 = scmp.ne.s32.totalorder %s21_s16, %s214_s26  ;;  %p220_p5 = scmp.lt.s32.totalorder %s214_s26, %s214_s26 }
   0xe   :  { %p221_p6 = por %p220_p5, %p219_p4 }
  0x10   :  { %p222_p7 = pnand %p221_p6, %p215_p3 }
  0x12   :  { %225 = shalt.err (!%p222_p7)
}
  0x13   :  { %23 = dma.hbm_to_vmem [thread:$0]  %s396_s0, 128, %s21_s16, [#allocation3]  }
  0x14   :  { %s226_s5 = scalar_lea.hbm %s397_s1, 512 }
  0x15   :  { %p227_p8 = scmp.ne.s32.totalorder %s397_s1, %s226_s5  ;;  %p230_p9 = scmp.lt.u32.totalorder %s226_s5, %s397_s1 }
  0x17   :  { %p232_p10 = pnand %p230_p9, %p227_p8 }
  0x19   :  { %235 = shalt.err (!%p232_p10)
}
  0x1a   :  { %s236_s10 = scalar_lea.vmem %s335_s18, 512  ;;  %p241_p12 = scmp.lt.s32.totalorder %s335_s18, %s335_s18 }
  0x1b   :  { %p237_p11 = scmp.ne.s32.totalorder %s335_s18, %s236_s10  ;;  %p242_p13 = scmp.lt.s32.totalorder %s236_s10, %s236_s10 }
  0x1d   :  { %p243_p0 = por %p242_p13, %p241_p12 }
  0x1f   :  { %p244_p1 = pnand %p243_p0, %p237_p11 }
  0x21   :  { %247 = shalt.err (!%p244_p1)
}
  0x22   :  { %s302_s0 = smov 128   ;;  %s303_s11 = smov 8  }
  0x23   :  { %35 = dma.hbm_to_vmem [thread:$0]  %s397_s1, 512, %s335_s18, [#allocation6], %s302_s0, %s302_s0, %s303_s11  }
  0x24   :  { %292 = dma.done.wait [#allocation3], 128  }
  0x25   :  { %293 = vsyncadd [#allocation3], 4294967168 }
  0x26   :  { %294 = dma.done.wait [#allocation6], 512  }
  0x27   :  { %295 = vsyncadd [#allocation6], 4294966784  ;;  %v304_v0 = vmov 0.0|0.0   ;;  %vm305_vm0 = vmmov 0   ;;  %v306_v1 = vmov 0.0   ;;  %v45_v2 = vld [vmem:[#allocation5] sm:$0xff] }
  0x28   :  { %186 = vmatprep.subr.bf16.mxu0 %v304_v0  ;;  %183 = vmatprep.mubr.msk.f32.mxu0 %vm305_vm0, %v306_v1  ;;  %v46_v3 = vld [vmem:[#allocation5 + $0x8] sm:$0xff]  ;;  %v47_v4 = vld [vmem:[#allocation5 + $0x10] sm:$0xff]  ;;  %v48_v6 = vld [vmem:[#allocation5 + $0x18] sm:$0xff]  ;;  %vm56_vm1 = vcmask 261120   ;;  %s307_s15 = smov [#allocation7]  }
  0x29   :  { %v187_v5 = vpack.c.bf16 %v46_v3, %v45_v2  ;;  %v190_v7 = vpack.c.bf16 %v48_v6, %v47_v4  ;;  %v44_v8 = vld [vmem:[#allocation2] sm:$0xff]  ;;  %s144_s16 = sshll.u32 %s307_s15, 4  ;;  %s145_s16 = int_to_ptr.vmem [resolvable:$true] %s144_s16 }
  0x2a   :  { %v168_v9 = vld [vmem:[%s398_s2] ss:$0 sm:$0xff]  ;;  %s248_s17 = scalar_lea.vmem %s145_s16, 128  ;;  %p253_p3 = scmp.lt.s32.totalorder %s145_s16, %s145_s16 }
  0x2b   :  { %188 = vmatpush3.bf16.msra.mxu0 %v187_v5  ;;  %p249_p2 = scmp.ne.s32.totalorder %s145_s16, %s248_s17  ;;  %p254_p4 = scmp.lt.s32.totalorder %s248_s17, %s248_s17 }
  0x2c   :  { %189 = vmatprep.subr.bf16.mxu0 %v304_v0 }
  0x2d   :  { %p255_p5 = por %p254_p4, %p253_p3 }
  0x2f   :  { %191 = vmatpush3.bf16.msra.mxu0 %v190_v7  ;;  %p256_p6 = pnand %p255_p5, %p249_p2 }
  0x32   :  { %184 = vmatmul.mubr.msk.f32.vlgmr.msra.gmra.mrb[0].mxu0 %vm56_vm1, %v44_v8 }
 0x105   :  { %v126_v10 = vpop.f32.mrb[0].mxu0 }
 0x106   :  { %v127_v11 = vadd.f32 %v168_v9, %v126_v10  ;;  %v185_v12 = vpop.f32.mrb[1].mxu0 }
 0x108   :  { %v131_v13 = vmul.f32 1.442695, %v127_v11  ;;  %130 = vst.msk [vmem:[#allocation7] sm:$0xff] %vm56_vm1, %v127_v11 }
 0x109   :  { %259 = shalt.err (!%p256_p6)
}
 0x10a   :  { %s260_s2 = scalar_lea.hbm %s399_s3, 128 }
 0x10b   :  { %p261_p7 = scmp.ne.s32.totalorder %s399_s3, %s260_s2  ;;  %p264_p8 = scmp.lt.u32.totalorder %s260_s2, %s399_s3 }
 0x10d   :  { %p266_p9 = pnand %p264_p8, %p261_p7 }
 0x10f   :  { %269 = shalt.err (!%p266_p9)
}
 0x110   :  { %147 = dma.vmem_to_hbm [thread:$0]  %s145_s16, 128, %s399_s3, [#allocation4]   ;;  %202 = vpow2.f32 %v131_v13 }
 0x111   :  { %s308_s26 = smov 96   ;;  %s309_s27 = smov [#allocation8]  }
 0x112   :  { %s154_s28 = sshll.u32 %s309_s27, 4  ;;  %s155_s28 = int_to_ptr.vmem [resolvable:$true] %s154_s28 }
 0x113   :  { %s270_s29 = scalar_lea.vmem %s155_s28, 128  ;;  %p275_p11 = scmp.lt.s32.totalorder %s155_s28, %s155_s28 }
 0x114   :  { %p271_p10 = scmp.ne.s32.totalorder %s155_s28, %s270_s29  ;;  %p276_p12 = scmp.lt.s32.totalorder %s270_s29, %s270_s29 }
 0x116   :  { %p277_p13 = por %p276_p12, %p275_p11 }
 0x118   :  { %p278_p0 = pnand %p277_p13, %p271_p10 }
 0x11a   :  { %v203_v14 = vpop.eup %202 }
 0x11b   :  { %134 = vrot.lane.b32.xlu0 %v203_v14, %s308_s26 }
 0x18d   :  { %v135_v15 = vpop.permute.xlu0 %134 }
 0x18e   :  { %137 = vst.msk [vmem:[#allocation8] sm:$0xff] %vm56_vm1, %v135_v15 }
 0x18f   :  { %281 = shalt.err (!%p278_p0)
}
 0x190   :  { %s282_s3 = scalar_lea.hbm %s400_s4, 128 }
 0x191   :  { %p283_p1 = scmp.ne.s32.totalorder %s400_s4, %s282_s3  ;;  %p286_p2 = scmp.lt.u32.totalorder %s282_s3, %s400_s4 }
 0x193   :  { %p288_p3 = pnand %p286_p2, %p283_p1 }
 0x195   :  { %291 = shalt.err (!%p288_p3)
}
 0x196   :  { %157 = dma.vmem_to_hbm [thread:$0]  %s155_s28, 128, %s400_s4, [#allocation9]  }
 0x197   :  { %296 = dma.done.wait [#allocation4], 128  }
 0x198   :  { %297 = vsyncadd [#allocation4], 4294967168 }
 0x199   :  { %298 = dma.done.wait [#allocation9], 128  }
 0x19a   :  { %299 = vsyncadd [#allocation9], 4294967168 }
 0x19b   :  { %164 = vsyncpa [#allocation3], 1 }
 0x19c   :  { %165 = vsyncpa [#allocation6], 1 }
 0x19d   :  { %166 = vsyncpa [#allocation4], 1 }
 0x19e   :  { %167 = vsyncpa [#allocation9], 1 }

</bundles_post_ra>
